<compile_context>
chip_gen: v7x
topology: tpu7x:2x2x1
jax: 0.10.0
libtpu: 0.0.40
codegen_flags: <defaults>
</compile_context>

<pallas_src>
import functools

import jax
import jax.numpy as jnp
import numpy as np
from jax import lax
from jax.experimental import pallas as pl
from jax.experimental.pallas import tpu as pltpu


# --------------------------------------------------------------------------------------
# Fast path: VMEM-resident token table, one-hot MXU gather.
# --------------------------------------------------------------------------------------
def _onehot_kernel(ids_ref, seg_ref, tok_ref, pos_ref, seg_tab_ref, *rest,
                   dropout_active: bool):
    if dropout_active:
        mask_ref, out_ref = rest
    else:
        (out_ref,) = rest
    TS, E = out_ref.shape
    V = tok_ref.shape[0]

    # Token gather as one-hot matmul (MXU); exact because one-hot rows have a single 1.
    ids = ids_ref[...]                                            # (TS, 1) int32
    col = lax.broadcasted_iota(jnp.int32, (TS, V), 1)
    onehot = (col == ids).astype(tok_ref.dtype)                   # (TS, V)
    tok_emb = jnp.dot(onehot, tok_ref[...],
                      preferred_element_type=jnp.float32)         # (TS, E) f32

    # Segment embedding: VPU select over the 3-row table.
    seg = seg_ref[...]                                            # (TS, 1) int32
    row0 = seg_tab_ref[0:1, :].astype(jnp.float32)
    row1 = seg_tab_ref[1:2, :].astype(jnp.float32)
    row2 = seg_tab_ref[2:3, :].astype(jnp.float32)
    seg_emb = jnp.where(seg == 0, row0, jnp.where(seg == 1, row1, row2))

    out = tok_emb + pos_ref[...].astype(jnp.float32) + seg_emb
    if dropout_active:
        out = out * mask_ref[...].astype(jnp.float32)             # mask is {0, 1/(1-p)}
    out_ref[...] = out.astype(out_ref.dtype)


# --------------------------------------------------------------------------------------
# Large-vocab path: HBM token table, chunked double-buffered DMA row gather.
# --------------------------------------------------------------------------------------
def _gather_kernel(ids_smem, seg_ref, tok_hbm, pos_ref, seg_tab_ref, *rest,
                   dropout_active: bool, chunk: int):
    if dropout_active:
        mask_ref, out_ref, gather_buf, dma_sem = rest
    else:
        out_ref, gather_buf, dma_sem = rest

    ts = pl.program_id(0)
    b = pl.program_id(1)
    n_seq_tiles = pl.num_programs(0)
    TS, E = out_ref.shape
    S = n_seq_tiles * TS
    base = b * S + ts * TS                 # flat token index of this tile's first row
    n_chunks = TS // chunk                 # static

    def issue(c, slot):
        # Burst of `chunk` row DMAs: tok_tab[ids[...]] -> gather_buf[slot].  Unrolled so the
        # scalar address computes co-issue with the descriptor pushes.
        start = base + c * chunk

        def body(i, carry):
            row = ids_smem[start + i]
            pltpu.make_async_copy(tok_hbm.at[pl.ds(row, 1), :],
                                  gather_buf.at[slot, pl.ds(i, 1), :],
                                  dma_sem.at[slot]).start()
            return carry

        lax.fori_loop(0, chunk, body, 0, unroll=True)

    def drain(slot):
        # One wait for the whole chunk: DMA semaphores count bytes, and the sum of the
        # `chunk` row copies is exactly the byte size of gather_buf[slot].
        pltpu.make_async_copy(gather_buf.at[slot], gather_buf.at[slot],
                              dma_sem.at[slot]).wait()

    # Hoist the 3-row segment table out of the chunk loop.
    row0 = seg_tab_ref[0:1, :].astype(jnp.float32)
    row1 = seg_tab_ref[1:2, :].astype(jnp.float32)
    row2 = seg_tab_ref[2:3, :].astype(jnp.float32)

    issue(0, 0)
    for c in range(n_chunks):              # static unrolled pipeline over chunks
        slot = c & 1
        if c + 1 < n_chunks:
            issue(c + 1, 1 - slot)         # prefetch next chunk while we compute this one
        drain(slot)

        sl = pl.ds(c * chunk, chunk)
        tok = gather_buf[slot].astype(jnp.float32)                # (chunk, E)
        seg = seg_ref[sl, :]                                      # (chunk, 1)
        seg_emb = jnp.where(seg == 0, row0, jnp.where(seg == 1, row1, row2))
        res = tok + pos_ref[sl, :].astype(jnp.float32) + seg_emb
        if dropout_active:
            res = res * mask_ref[sl, :].astype(jnp.float32)
        out_ref[sl, :] = res.astype(out_ref.dtype)


# --------------------------------------------------------------------------------------
# Wrapper
# --------------------------------------------------------------------------------------
def _pick_seq_tile(S: int) -> int:
    for cand in (512, 256, 128, 64, 32, 16, 8):
        if S % cand == 0:
            return cand
    raise ValueError(f"sequence length {S} must be a multiple of 8")


def bert_embedding(ids, segment_label, tok_tab, pos_tab, seg_tab, *,
                   dropout_p=0.1, training=False, rng_key=None,
                   out_dtype=jnp.float32, force_gather=False,
                   vmem_table_limit_bytes=4 * 1024 * 1024):
    """Pallas-TPU forward of BERTEmbedding (token + position + segment, then dropout)."""
    B, S = ids.shape
    V, E = tok_tab.shape
    assert S <= pos_tab.shape[0], "sequence longer than the position table"
    TS = _pick_seq_tile(S)
    n_seq_tiles = S // TS
    N = B * S

    ids2d = ids.reshape(N, 1).astype(jnp.int32)
    seg2d = segment_label.reshape(N, 1).astype(jnp.int32)
    pos_slice = pos_tab[:S]

    with_mask = bool(training) and float(dropout_p) > 0.0
    if with_mask:
        if rng_key is None:
            rng_key = jax.random.PRNGKey(0)
        keep = jax.random.bernoulli(rng_key, 1.0 - float(dropout_p), (N, E))
        mask = keep.astype(jnp.float32) / (1.0 - float(dropout_p))   # {0, 1/(1-p)}

    table_bytes = V * E * jnp.dtype(tok_tab.dtype).itemsize
    use_gather = force_gather or table_bytes > vmem_table_limit_bytes

    row_map = lambda ts, b: (b * n_seq_tiles + ts, 0)
    out_spec = pl.BlockSpec((TS, E), row_map)
    compiler_params = pltpu.CompilerParams(
        dimension_semantics=("parallel", "parallel"))

    if not use_gather:
        # -------- small-vocab fast path: VMEM-resident table + one-hot MXU gather --------
        in_specs = [
            pl.BlockSpec((TS, 1), row_map),                      # token ids
            pl.BlockSpec((TS, 1), row_map),                      # segment labels
            pl.BlockSpec((V, E), lambda ts, b: (0, 0)),          # token table (resident)
            pl.BlockSpec((TS, E), lambda ts, b: (ts, 0)),        # position rows (reused over b)
            pl.BlockSpec((3, E), lambda ts, b: (0, 0)),          # segment table
        ]
        operands = [ids2d, seg2d, tok_tab, pos_slice, seg_tab]
        if with_mask:
            in_specs.append(pl.BlockSpec((TS, E), row_map))
            operands.append(mask)

        out_flat = pl.pallas_call(
            functools.partial(_onehot_kernel, dropout_active=with_mask),
            out_shape=jax.ShapeDtypeStruct((N, E), out_dtype),
            grid_spec=pltpu.PrefetchScalarGridSpec(
                num_scalar_prefetch=0,
                grid=(n_seq_tiles, B),
                in_specs=in_specs,
                out_specs=out_spec),
            compiler_params=compiler_params,
        )(*operands)
    else:
        # -------- large-vocab path: HBM table + chunked double-buffered DMA gather --------
        chunk = TS if TS <= 64 else 64
        row_map_p = lambda ts, b, ids_ref: (b * n_seq_tiles + ts, 0)
        in_specs = [
            pl.BlockSpec((TS, 1), row_map_p),                            # segment labels
            pl.BlockSpec(memory_space=pl.ANY),                           # token table (HBM)
            pl.BlockSpec((TS, E), lambda ts, b, ids_ref: (ts, 0)),       # position rows
            pl.BlockSpec((3, E), lambda ts, b, ids_ref: (0, 0)),         # segment table
        ]
        operands = [seg2d, tok_tab, pos_slice, seg_tab]
        if with_mask:
            in_specs.append(pl.BlockSpec((TS, E), row_map_p))
            operands.append(mask)

        ids_flat = ids2d.reshape(N)                                      # -> SMEM (prefetch)
        out_flat = pl.pallas_call(
            functools.partial(_gather_kernel, dropout_active=with_mask, chunk=chunk),
            out_shape=jax.ShapeDtypeStruct((N, E), out_dtype),
            grid_spec=pltpu.PrefetchScalarGridSpec(
                num_scalar_prefetch=1,                                   # token ids
                grid=(n_seq_tiles, B),
                in_specs=in_specs,
                out_specs=pl.BlockSpec((TS, E), row_map_p),
                scratch_shapes=[
                    pltpu.VMEM((2, chunk, E), tok_tab.dtype),            # double buffer
                    pltpu.SemaphoreType.DMA((2,)),                       # one sem per slot
                ]),
            compiler_params=compiler_params,
        )(ids_flat, *operands)

    return out_flat.reshape(B, S, E)


# --------------------------------------------------------------------------------------
# Demo / self-test
# --------------------------------------------------------------------------------------
if __name__ == "__main__":
    vocab_size = 96
    embedding_size = 128
    seq_max_len = 512
    B, S = 2, 384            # S // TS = 3 sequence tiles -> exercises the grid
    dropout_p = 0.1

    key = jax.random.PRNGKey(0)
    k_tok, k_pos, k_seg, k_ids, k_lab, k_drop = jax.random.split(key, 6)

    # nn.Embedding default init: N(0, 1)
    tok_tab = jax.random.normal(k_tok, (vocab_size, embedding_size), jnp.float32)
    pos_tab = jax.random.normal(k_pos, (seq_max_len, embedding_size), jnp.float32)
    seg_tab = jax.random.normal(k_seg, (3, embedding_size), jnp.float32)

    ids = jax.random.randint(k_ids, (B, S), 0, vocab_size, dtype=jnp.int32)
    segment_label = jax.random.randint(k_lab, (B, S), 0, 3, dtype=jnp.int32)

    ref = np.asarray(tok_tab[ids] + pos_tab[:S][None, :, :] + seg_tab[segment_label])

    # 1) Eval mode, small-vocab fast path (VMEM-resident table, one-hot MXU gather).
    out_fast = bert_embedding(ids, segment_label, tok_tab, pos_tab, seg_tab,
                              dropout_p=dropout_p, training=False)
    out_fast = jax.block_until_ready(out_fast)
    np.testing.assert_allclose(np.asarray(out_fast), ref, rtol=1e-5, atol=1e-5)

    # 2) Eval mode, forced HBM DMA-gather path (chunked + double-buffered + one wait/chunk).
    out_gather = bert_embedding(ids, segment_label, tok_tab, pos_tab, seg_tab,
                                dropout_p=dropout_p, training=False, force_gather=True)
    out_gather = jax.block_until_ready(out_gather)
    np.testing.assert_allclose(np.asarray(out_gather), ref, rtol=1e-5, atol=1e-5)

    # 3) Training mode (inverted dropout with a host-generated mask applied in-kernel).
    out_train = bert_embedding(ids, segment_label, tok_tab, pos_tab, seg_tab,
                               dropout_p=dropout_p, training=True, rng_key=k_drop)
    out_train = jax.block_until_ready(out_train)
    t = np.asarray(out_train)
    assert np.all(np.isfinite(t))
    zero_frac = float(np.mean(t == 0.0))
    assert 0.02 < zero_frac < 0.3, zero_frac          # ~dropout_p of elements dropped

    # Exact check against the same mask stream used inside the wrapper.
    keep = jax.random.bernoulli(k_drop, 1.0 - dropout_p, (B * S, embedding_size))
    mask = (keep.astype(jnp.float32) / (1.0 - dropout_p)).reshape(B, S, embedding_size)
    np.testing.assert_allclose(t, ref * np.asarray(mask), rtol=1e-5, atol=1e-5)

    print("KERNEL_OK")
</pallas_src>

<mosaic_0001>
module attributes {stable_mosaic.version = 11 : i64} {
  func.func @_onehot_kernel(%arg0: i32, %arg1: i32, %arg2: memref<128x1xi32, #tpu.memory_space<vmem>>, %arg3: memref<128x1xi32, #tpu.memory_space<vmem>>, %arg4: memref<96x128xf32, #tpu.memory_space<vmem>>, %arg5: memref<128x128xf32, #tpu.memory_space<vmem>>, %arg6: memref<3x128xf32, #tpu.memory_space<vmem>>, %arg7: memref<128x128xf32, #tpu.memory_space<vmem>>) attributes {dimension_semantics = [#tpu.dimension_semantics<parallel>, #tpu.dimension_semantics<parallel>], iteration_bounds = array<i64: 3, 2>, scalar_prefetch = 0 : i64, scratch_operands = 0 : i64, tpu.core_type = #tpu.core_type<tc>, window_params = [{transform_indices = @transform_0, window_bounds = array<i64: 128, 1>}, {transform_indices = @transform_1, window_bounds = array<i64: 128, 1>}, {pipeline_mode = #tpu.pipeline_mode<synchronous>, transform_indices = @transform_2, window_bounds = array<i64: 96, 128>}, {transform_indices = @transform_3, window_bounds = array<i64: 128, 128>}, {pipeline_mode = #tpu.pipeline_mode<synchronous>, transform_indices = @transform_4, window_bounds = array<i64: 3, 128>}, {transform_indices = @transform_5, window_bounds = array<i64: 128, 128>}]} {
    %c0 = arith.constant 0 : index
    %c0_0 = arith.constant 0 : index
    %0 = vector.load %arg2[%c0, %c0_0] : memref<128x1xi32, #tpu.memory_space<vmem>>, vector<128x1xi32>
    %1 = tpu.iota {dimensions = array<i32: 1>} : vector<128x96xi32>
    %2 = vector.broadcast %0 : vector<128x1xi32> to vector<128x96xi32>
    %3 = arith.cmpi eq, %1, %2 : vector<128x96xi32>
    %4 = arith.extui %3 : vector<128x96xi1> to vector<128x96xi32>
    %5 = arith.sitofp %4 : vector<128x96xi32> to vector<128x96xf32>
    %c0_1 = arith.constant 0 : index
    %c0_2 = arith.constant 0 : index
    %6 = vector.load %arg4[%c0_1, %c0_2] : memref<96x128xf32, #tpu.memory_space<vmem>>, vector<96x128xf32>
    %cst = arith.constant dense<0.000000e+00> : vector<128x128xf32>
    %7 = tpu.matmul %5, %6, %cst {dimension_numbers = #tpu.dot_dimension_numbers<[1], [0], [0], [1], [0, 0, 1, 1], [], []>} : vector<128x96xf32>, vector<96x128xf32>, vector<128x128xf32> -> vector<128x128xf32>
    %c0_3 = arith.constant 0 : index
    %c0_4 = arith.constant 0 : index
    %8 = vector.load %arg3[%c0_3, %c0_4] : memref<128x1xi32, #tpu.memory_space<vmem>>, vector<128x1xi32>
    %c0_5 = arith.constant 0 : index
    %c0_6 = arith.constant 0 : index
    %9 = vector.load %arg6[%c0_5, %c0_6] : memref<3x128xf32, #tpu.memory_space<vmem>>, vector<1x128xf32>
    %c1 = arith.constant 1 : index
    %c0_7 = arith.constant 0 : index
    %10 = vector.load %arg6[%c1, %c0_7] : memref<3x128xf32, #tpu.memory_space<vmem>>, vector<1x128xf32>
    %c2 = arith.constant 2 : index
    %c0_8 = arith.constant 0 : index
    %11 = vector.load %arg6[%c2, %c0_8] : memref<3x128xf32, #tpu.memory_space<vmem>>, vector<1x128xf32>
    %c0_i32 = arith.constant 0 : i32
    %12 = vector.broadcast %c0_i32 : i32 to vector<128x1xi32>
    %13 = arith.cmpi eq, %8, %12 : vector<128x1xi32>
    %c1_i32 = arith.constant 1 : i32
    %14 = vector.broadcast %c1_i32 : i32 to vector<128x1xi32>
    %15 = arith.cmpi eq, %8, %14 : vector<128x1xi32>
    %16 = vector.shape_cast %15 : vector<128x1xi1> to vector<128x1xi1>
    %17 = vector.broadcast %16 : vector<128x1xi1> to vector<128x128xi1>
    %18 = vector.shape_cast %10 : vector<1x128xf32> to vector<1x128xf32>
    %19 = vector.broadcast %18 : vector<1x128xf32> to vector<128x128xf32>
    %20 = vector.shape_cast %11 : vector<1x128xf32> to vector<1x128xf32>
    %21 = vector.broadcast %20 : vector<1x128xf32> to vector<128x128xf32>
    %22 = arith.select %17, %19, %21 : vector<128x128xi1>, vector<128x128xf32>
    %23 = vector.shape_cast %13 : vector<128x1xi1> to vector<128x1xi1>
    %24 = vector.broadcast %23 : vector<128x1xi1> to vector<128x128xi1>
    %25 = vector.shape_cast %9 : vector<1x128xf32> to vector<1x128xf32>
    %26 = vector.broadcast %25 : vector<1x128xf32> to vector<128x128xf32>
    %27 = arith.select %24, %26, %22 : vector<128x128xi1>, vector<128x128xf32>
    %c0_9 = arith.constant 0 : index
    %c0_10 = arith.constant 0 : index
    %28 = vector.load %arg5[%c0_9, %c0_10] : memref<128x128xf32, #tpu.memory_space<vmem>>, vector<128x128xf32>
    %29 = arith.addf %7, %28 : vector<128x128xf32>
    %30 = arith.addf %29, %27 : vector<128x128xf32>
    %c0_11 = arith.constant 0 : index
    %c0_12 = arith.constant 0 : index
    %31 = vector.load %arg7[%c0_11, %c0_12] : memref<128x128xf32, #tpu.memory_space<vmem>>, vector<128x128xf32>
    tpu.vector_store %arg7[%c0_11, %c0_12], %30 {strides = array<i32>} : memref<128x128xf32, #tpu.memory_space<vmem>>, vector<128x128xf32>,
    return
  }
  func.func @transform_0(%arg0: i32, %arg1: i32) -> (i32, i32) {
    %c3_i32 = arith.constant 3 : i32
    %0 = arith.muli %arg1, %c3_i32 : i32
    %1 = arith.addi %0, %arg0 : i32
    %c0_i32 = arith.constant 0 : i32
    %c0_i32_0 = arith.constant 0 : i32
    return %1, %c0_i32 : i32, i32
  }
  func.func @transform_1(%arg0: i32, %arg1: i32) -> (i32, i32) {
    %c3_i32 = arith.constant 3 : i32
    %0 = arith.muli %arg1, %c3_i32 : i32
    %1 = arith.addi %0, %arg0 : i32
    %c0_i32 = arith.constant 0 : i32
    %c0_i32_0 = arith.constant 0 : i32
    return %1, %c0_i32 : i32, i32
  }
  func.func @transform_2(%arg0: i32, %arg1: i32) -> (i32, i32) {
    %c0_i32 = arith.constant 0 : i32
    %c0_i32_0 = arith.constant 0 : i32
    %c0_i32_1 = arith.constant 0 : i32
    return %c0_i32, %c0_i32_0 : i32, i32
  }
  func.func @transform_3(%arg0: i32, %arg1: i32) -> (i32, i32) {
    %c0_i32 = arith.constant 0 : i32
    %c0_i32_0 = arith.constant 0 : i32
    return %arg0, %c0_i32 : i32, i32
  }
  func.func @transform_4(%arg0: i32, %arg1: i32) -> (i32, i32) {
    %c0_i32 = arith.constant 0 : i32
    %c0_i32_0 = arith.constant 0 : i32
    %c0_i32_1 = arith.constant 0 : i32
    return %c0_i32, %c0_i32_0 : i32, i32
  }
  func.func @transform_5(%arg0: i32, %arg1: i32) -> (i32, i32) {
    %c3_i32 = arith.constant 3 : i32
    %0 = arith.muli %arg1, %c3_i32 : i32
    %1 = arith.addi %0, %arg0 : i32
    %c0_i32 = arith.constant 0 : i32
    %c0_i32_0 = arith.constant 0 : i32
    return %1, %c0_i32 : i32, i32
  }
}

</mosaic_0001>

<bundles_post_ra>
// kernel: tpu_custom_call.1
= control target key start
LH: loop header
LB: loop body
LE: loop exit
PB: predicated region body
PF: predicated region fallthrough
CT: control target
= control target key end

     0   :  { %10 = vsyncpa [#allocation3], 0  ;;  %s1955_s0 = inlined_call_operand.vmem [shape: s32[768,1], index: 0, kind: input, shape index: {}]   ;;  %s1956_s1 = inlined_call_operand.vmem [shape: s32[768,1], index: 1, kind: input, shape index: {}]   ;;  %s1957_s2 = inlined_call_operand.vmem [shape: f32[96,128], index: 2, kind: input, shape index: {}]   ;;  %s1958_s3 = inlined_call_operand.vmem [shape: f32[384,128], index: 3, kind: input, shape index: {}]   ;;  %s1959_s4 = inlined_call_operand.vmem [shape: f32[3,128], index: 4, kind: input, shape index: {}]   ;;  %s1960_s5 = inlined_call_operand.hbm [shape: f32[768,128], index: 5, kind: output, shape index: {}]  }
   0x1   :  { %12 = vsyncpa [#allocation3 + $0x1], 0  ;;  %s1427_s18 = smov 0   ;;  %s1429_s19 = smov 0  }
   0x2   :  { %s1431_s20 = smov 0   ;;  %s1433_s21 = smov 0  }
   0x3   :  { %s1435_s22 = smov 0   ;;  %s1437_s23 = smov 0  }
   0x4   :  { %s1439_s24 = smov 0   ;;  %s1441_s25 = smov 0  }
   0x5 LB: > { %s1054_s26 = sadd.s32 4294967295, %s1390_s25   ;;  %s1055_s27 = sadd.s32 4294967294, %s1390_s25   ;;  %s1390_s25 = sphi %s1441_s25, %s18_s25   ;;  %s1386_s24 = sphi %s1439_s24, %s1969_s24   ;;  %s1382_s23 = sphi %s1437_s23, %s1968_s23   ;;  %s1378_s22 = sphi %s1435_s22, %s1967_s22   ;;  %s1374_s21 = sphi %s1433_s21, %s1966_s21   ;;  %s1370_s20 = sphi %s1431_s20, %s1965_s20   ;;  %s1366_s19 = sphi %s1429_s19, %s1964_s19   ;;  %s1362_s18 = sphi %s1427_s18, %s1963_s18  }
   0x6   : > { %s27_s28 = sadd.s32 1, %s1382_s23  ;;  %s30_s29 = sadd.s32 1, %s1386_s24 }
   0x7   : > { %p28_p0 = scmp.ge.s32.totalorder %s27_s28, 2  ;;  %s162_s30 = smul.u32 3, %s1382_s23 }
   0x8   : > { %s169_s6 = sadd.s32 1, %s1370_s20  ;;  %p179_p1 = scmp.ne.s32.totalorder %s1370_s20, %s1366_s19 }
   0x9   : > { %s1971_s28 = smov (%p28_p0, %s27_s28), 0  ;;  %s1973_s29 = smov (!%p28_p0, %s30_s29), %s1386_s24 }
   0xa   : > { %s163_s7 = sadd.s32 %s1386_s24, %s162_s30  ;;  %s164_s8 = smul.u32 3, %s1971_s28 }
   0xb   : > { %p32_p2 = scmp.ge.s32.totalorder %s1973_s29, 3  ;;  %p180_p3 = scmp.eq.s32.totalorder %s1054_s26, 5 }
   0xc   : > { %p185_p4 = scmp.ne.s32.totalorder %s1366_s19, %s1362_s18  ;;  %p186_p5 = scmp.eq.s32.totalorder %s1055_s27, 5 }
   0xd   : > { %s1975_s29 = smov (%p32_p2, %s1973_s29), 0  ;;  %p1484_p6 = por %p180_p3, %p179_p1 }
   0xe   : > { %p1488_p7 = por %p186_p5, %p185_p4  ;;  %s165_s11 = sadd.s32 %s164_s8, %s1975_s29 }
   0xf   : > { %p1058_p8 = scmp.ge.s32.totalorder %s1390_s25, 1  ;;  %s166_s12 = ssub.s32 %s163_s7, %s165_s11 }
  0x10   : > { %p245_p9 = scmp.lt.s32.totalorder %s1390_s25, 7  ;;  %p167_p10 = scmp.eq.s32.totalorder %s166_s12, 0 }
  0x12   : > { %p246_p11 = pnand %p1058_p8, %p245_p9 }
  0x13   : > { %s1496_s13 = scalar_select %p167_p10, %s1370_s20, %s169_s6  }
  0x14   : > { %249 = sbr.rel (%p246_p11) target bundleno = 421 (0x1a5), region = 40  ;;  %v430_v0 = vld [vmem:[%s1957_s2] sm:$0xff] (!%p246_p11)  ;;  %v431_v1 = vld [vmem:[%s1957_s2 + $0x8] sm:$0xff] (!%p246_p11)  ;;  %v432_v2 = vld [vmem:[%s1957_s2 + $0x10] sm:$0xff] (!%p246_p11)  ;;  %v1392_v3 = vmov (!%p246_p11), 0   ;;  %s1394_s27 = smov (!%p246_p11), [#allocation2]  }
  0x15   : > { %s287_s14 = smul.u32 (!%p246_p11), 3, %s1374_s21  ;;  %1295 = vset.pattern.permute.xlu1 (!%p246_p11), %v1392_v3  ;;  %1294 = vset.pattern.permute.xlu0 (!%p246_p11), %v1392_v3  ;;  %v1183_v4 = vpack.c.bf16 (!%p246_p11), %v431_v1, %v430_v0  ;;  %v433_v5 = vld [vmem:[%s1957_s2 + $0x18] sm:$0xff] (!%p246_p11)  ;;  %v434_v7 = vld [vmem:[%s1957_s2 + $0x20] sm:$0xff] (!%p246_p11)  ;;  %v435_v8 = vld [vmem:[%s1957_s2 + $0x28] sm:$0xff] (!%p246_p11)  ;;  %s1300_s6 = sshll.u32 (!%p246_p11), %s1394_s27, 4  ;;  %s1301_s6 = int_to_ptr.vmem [resolvable:$false] %s1300_s6 }
  0x16   : > { %v1187_v6 = vpack.c.bf16 (!%p246_p11), %v433_v5, %v432_v2  ;;  %v1191_v9 = vpack.c.bf16 (!%p246_p11), %v435_v8, %v434_v7  ;;  %v436_v10 = vld [vmem:[%s1957_s2 + $0x30] sm:$0xff] (!%p246_p11)  ;;  %v437_v11 = vld [vmem:[%s1957_s2 + $0x38] sm:$0xff] (!%p246_p11)  ;;  %v438_v13 = vld [vmem:[%s1957_s2 + $0x40] sm:$0xff] (!%p246_p11)  ;;  %s1302_s21 = scalar_lea.vmem (!%p246_p11), %s1301_s6, 4096 }
  0x17   : > { %s1514_s7 = sadd.s32 (!%p246_p11), %s1378_s22, %s287_s14  ;;  %1184 = vmatprep.subr.bf16.mxu0 (!%p246_p11), %v1183_v4  ;;  %1207 = vmatprep.subr.bf16.mxu1 (!%p246_p11), %v1183_v4  ;;  %v1195_v12 = vpack.c.bf16 (!%p246_p11), %v437_v11, %v436_v10  ;;  %v439_v16 = vld [vmem:[%s1957_s2 + $0x48] sm:$0xff] (!%p246_p11)  ;;  %v440_v20 = vld [vmem:[%s1957_s2 + $0x50] sm:$0xff] (!%p246_p11)  ;;  %v441_v21 = vld [vmem:[%s1957_s2 + $0x58] sm:$0xff] (!%p246_p11)  ;;  %s284_s14 = sand.u32 (!%p246_p11), 1, %s1366_s19  }
  0x18   : > { %s1060_s16 = sshll.u32 (!%p246_p11), %s1514_s7, 4  ;;  %1186 = vmatpush3.bf16.msra.mxu0 (!%p246_p11), %v1183_v4  ;;  %1213 = vmatpush3.bf16.msra.mxu1 (!%p246_p11), %v1183_v4  ;;  %v1199_v19 = vpack.c.bf16 (!%p246_p11), %v439_v16, %v438_v13  ;;  %v1203_v24 = vpack.c.bf16 (!%p246_p11), %v441_v21, %v440_v20  ;;  %v332_v20 = vlaneseq (!%p246_p11)  ;;  %s1903_s17 = scalar_lea.sflag (!%p246_p11), [#allocation3], %s284_s14 }
  0x19   : > { %p290_p12 = scmp.lt.s32.totalorder (!%p246_p11), %s1060_s16, 95  ;;  %1188 = vmatprep.subr.bf16.mxu0 (!%p246_p11), %v1187_v6  ;;  %1208 = vmatprep.subr.bf16.mxu1 (!%p246_p11), %v1187_v6 }
  0x1a   : > { %v1670_v21 = vand.u32 (!%p246_p11), 127, %v332_v20 }
  0x1b   : > { %s1977_s16 = smov (!%p290_p12, %s1060_s16), 95 }
  0x1c   : > { %s1061_s30 = sshll.u32 %s1977_s16, 3  ;;  %1190 = vmatpush3.bf16.msra.mxu0 %v1187_v6  ;;  %1214 = vmatpush3.bf16.msra.mxu1 %v1187_v6  ;;  %s1064_s16 = sshll.u32 %s1378_s22, 4 }
  0x1d   : > { %s1537_s8 = scalar_lea.vmem %s1955_s0, %s1061_s30  ;;  %1192 = vmatprep.subr.bf16.mxu0 %v1191_v9  ;;  %1209 = vmatprep.subr.bf16.mxu1 %v1191_v9  ;;  %s1568_s12 = scalar_lea.vmem %s1956_s1, %s1061_s30 }
  0x1e   : > { %v317_v14 = vld [vmem:[%s1537_s8 + $0x8] sm:$0xff]  ;;  %v316_v15 = vld [vmem:[%s1537_s8] sm:$0xff]  ;;  %v326_v22 = vld [vmem:[%s1537_s8 + $0x50] sm:$0xff]  ;;  %p308_p13 = scmp.lt.s32.totalorder %s1064_s16, 47 }
  0x1f   : > { %338 = vperm.xlu1 %1295, %v317_v14   ;;  %335 = vperm.xlu0 %1294, %v316_v15   ;;  %v325_v17 = vld [vmem:[%s1537_s8 + $0x48] sm:$0xff]  ;;  %v324_v18 = vld [vmem:[%s1537_s8 + $0x40] sm:$0xff]  ;;  %v318_v23 = vld [vmem:[%s1537_s8 + $0x10] sm:$0xff] }
  0x20   : > { %1194 = vmatpush3.bf16.msra.mxu0 %v1191_v9  ;;  %1215 = vmatpush3.bf16.msra.mxu1 %v1191_v9  ;;  %v327_v25 = vld [vmem:[%s1537_s8 + $0x58] sm:$0xff]  ;;  %v328_v27 = vld [vmem:[%s1537_s8 + $0x60] sm:$0xff]  ;;  %v329_v29 = vld [vmem:[%s1537_s8 + $0x68] sm:$0xff]  ;;  %s1979_s16 = smov (!%p308_p13, %s1064_s16), 47 }
  0x21   : > { %1196 = vmatprep.subr.bf16.mxu0 %v1195_v12  ;;  %1210 = vmatprep.subr.bf16.mxu1 %v1195_v12  ;;  %v319_v26 = vld [vmem:[%s1537_s8 + $0x18] sm:$0xff]  ;;  %v320_v28 = vld [vmem:[%s1537_s8 + $0x20] sm:$0xff]  ;;  %v321_v30 = vld [vmem:[%s1537_s8 + $0x28] sm:$0xff]  ;;  %s1065_s30 = sshll.u32 %s1979_s16, 3 }
  0x22   : > { %v330_v31 = vld [vmem:[%s1537_s8 + $0x70] sm:$0xff]  ;;  %v1573_v33 = vld [vmem:[%s1568_s12 + $0x8] sm:$0xff]  ;;  %v1576_v34 = vld [vmem:[%s1568_s12] sm:$0xff]  ;;  %s1744_s22 = scalar_lea.vmem %s1958_s3, %s1065_s30  ;;  %s1106_s30 = sshll.u32 %s1514_s7, 11 }
  0x23   : > { %362 = vperm.xlu1 %1295, %v325_v17   ;;  %359 = vperm.xlu0 %1294, %v324_v18   ;;  %v322_v32 = vld [vmem:[%s1537_s8 + $0x30] sm:$0xff]  ;;  %v331_v35 = vld [vmem:[%s1537_s8 + $0x78] sm:$0xff]  ;;  %vm478_vm0 = vcmp.eq.s32.totalorder %v1573_v33, 1  ;;  %vm477_vm1 = vcmp.eq.s32.totalorder %v1576_v34, 1  ;;  %v1593_v41 = vld [vmem:[%s1568_s12 + $0x28] sm:$0xff] }
  0x24   : > { %1198 = vmatpush3.bf16.msra.mxu0 %v1195_v12  ;;  %1216 = vmatpush3.bf16.msra.mxu1 %v1195_v12  ;;  %v323_v36 = vld [vmem:[%s1537_s8 + $0x38] sm:$0xff]  ;;  %v1586_v38 = vld [vmem:[%s1568_s12 + $0x10] sm:$0xff]  ;;  %v494_v39 = vsel %vm478_vm0, 1, %v1392_v3  ;;  %v493_v40 = vsel %vm477_vm1, 1, %v1392_v3  ;;  %v1596_v42 = vld [vmem:[%s1568_s12 + $0x20] sm:$0xff]  ;;  %vm482_vm4 = vcmp.eq.s32.totalorder %v1593_v41, 1 }
  0x25   : > { %1200 = vmatprep.subr.bf16.mxu0 %v1199_v19  ;;  %1211 = vmatprep.subr.bf16.mxu1 %v1199_v19  ;;  %v1583_v37 = vld [vmem:[%s1568_s12 + $0x18] sm:$0xff]  ;;  %vm479_vm3 = vcmp.eq.s32.totalorder %v1586_v38, 1  ;;  %vm481_vm5 = vcmp.eq.s32.totalorder %v1596_v42, 1  ;;  %v1606_v46 = vld [vmem:[%s1568_s12 + $0x30] sm:$0xff]  ;;  %v498_v47 = vsel %vm482_vm4, 1, %v1392_v3  ;;  %v1613_v49 = vld [vmem:[%s1568_s12 + $0x48] sm:$0xff] }
  0x26   : > { %vm480_vm2 = vcmp.eq.s32.totalorder %v1583_v37, 1  ;;  %v495_v44 = vsel %vm479_vm3, 1, %v1392_v3  ;;  %v1603_v45 = vld [vmem:[%s1568_s12 + $0x38] sm:$0xff]  ;;  %v497_v48 = vsel %vm481_vm5, 1, %v1392_v3  ;;  %vm483_vm7 = vcmp.eq.s32.totalorder %v1606_v46, 1  ;;  %v1616_v50 = vld [vmem:[%s1568_s12 + $0x40] sm:$0xff] }
  0x27   : > { %365 = vperm.xlu1 %1295, %v326_v22   ;;  %341 = vperm.xlu0 %1294, %v318_v23   ;;  %v496_v43 = vsel %vm480_vm2, 1, %v1392_v3  ;;  %vm484_vm6 = vcmp.eq.s32.totalorder %v1603_v45, 1  ;;  %v499_v52 = vsel %vm483_vm7, 1, %v1392_v3  ;;  %vm486_vm8 = vcmp.eq.s32.totalorder %v1613_v49, 1  ;;  %v1623_v53 = vld [vmem:[%s1568_s12 + $0x58] sm:$0xff]  ;;  %v1626_v54 = vld [vmem:[%s1568_s12 + $0x50] sm:$0xff] }
  0x28   : > { %1202 = vmatpush3.bf16.msra.mxu0 %v1199_v19  ;;  %1217 = vmatpush3.bf16.msra.mxu1 %v1199_v19  ;;  %v500_v51 = vsel %vm484_vm6, 1, %v1392_v3  ;;  %vm485_vm9 = vcmp.eq.s32.totalorder %v1616_v50, 1  ;;  %v502_v55 = vsel %vm486_vm8, 1, %v1392_v3  ;;  %vm488_vm10 = vcmp.eq.s32.totalorder %v1623_v53, 1  ;;  %v455_v57 = vld [vmem:[%s1568_s12 + $0x68] sm:$0xff]  ;;  %v454_v58 = vld [vmem:[%s1568_s12 + $0x60] sm:$0xff] }
  0x29   : > { %1204 = vmatprep.subr.bf16.mxu0 %v1203_v24  ;;  %1212 = vmatprep.subr.bf16.mxu1 %v1203_v24  ;;  %v501_v56 = vsel %vm485_vm9, 1, %v1392_v3  ;;  %vm487_vm11 = vcmp.eq.s32.totalorder %v1626_v54, 1  ;;  %v504_v59 = vsel %vm488_vm10, 1, %v1392_v3  ;;  %vm490_vm12 = vcmp.eq.s32.totalorder %v455_v57, 1  ;;  %v457_v61 = vld [vmem:[%s1568_s12 + $0x78] sm:$0xff]  ;;  %v456_v62 = vld [vmem:[%s1568_s12 + $0x70] sm:$0xff] }
  0x2a   : > { %v503_v60 = vsel %vm487_vm11, 1, %v1392_v3  ;;  %vm489_vm13 = vcmp.eq.s32.totalorder %v454_v58, 1  ;;  %v506_v63 = vsel %vm490_vm12, 1, %v1392_v3  ;;  %vm492_vm14 = vcmp.eq.s32.totalorder %v457_v61, 1  ;;  %s1059_s12 = sshll.u32 %s284_s14, 7 }
  0x2b   : > { %368 = vperm.xlu1 %1295, %v327_v25   ;;  %344 = vperm.xlu0 %1294, %v319_v26   ;;  %v505_v0 = vsel %vm489_vm13, 1, %v1392_v3  ;;  %vm491_vm15 = vcmp.eq.s32.totalorder %v456_v62, 1  ;;  %v508_v1 = vsel %vm492_vm14, 1, %v1392_v3  ;;  %vm462_vm0 = vcmp.eq.s32.totalorder %v1573_v33, 0  ;;  %s1776_s16 = scalar_lea.vmem [#allocation2], %s1059_s12 }
  0x2c   : > { %1206 = vmatpush3.bf16.msra.mxu0 %v1203_v24  ;;  %1218 = vmatpush3.bf16.msra.mxu1 %v1203_v24  ;;  %v507_v2 = vsel %vm491_vm15, 1, %v1392_v3  ;;  %vm461_vm1 = vcmp.eq.s32.totalorder %v1576_v34, 0  ;;  %v598_v4 = vsel %vm462_vm0, 1, %v1392_v3  ;;  %vm464_vm2 = vcmp.eq.s32.totalorder %v1583_v37, 0  ;;  %s955_s7 = sshll.u32 %s1776_s16, 4  ;;  %s1895_s7 = int_to_ptr.vmem [resolvable:$true] %s955_s7 }
  0x2d   : > { %v597_v5 = vsel %vm461_vm1, 1, %v1392_v3  ;;  %vm463_vm3 = vcmp.eq.s32.totalorder %v1586_v38, 0  ;;  %v600_v6 = vsel %vm464_vm2, 1, %v1392_v3  ;;  %vm466_vm4 = vcmp.eq.s32.totalorder %v1593_v41, 0  ;;  %s1296_s26 = scalar_lea.vmem %s1895_s7, 2048  ;;  %p1303_p3 = scmp.lt.s32.totalorder %s1895_s7, %s1301_s6 }
  0x2e   : > { %v599_v7 = vsel %vm463_vm3, 1, %v1392_v3  ;;  %vm465_vm5 = vcmp.eq.s32.totalorder %v1596_v42, 0  ;;  %v602_v8 = vsel %vm466_vm4, 1, %v1392_v3  ;;  %vm468_vm6 = vcmp.eq.s32.totalorder %v1603_v45, 0  ;;  %p1297_p0 = scmp.ne.s32.totalorder %s1895_s7, %s1296_s26  ;;  %p1304_p4 = scmp.lt.s32.totalorder %s1302_s21, %s1296_s26 }
  0x2f   : > { %371 = vperm.xlu1 %1295, %v328_v27   ;;  %347 = vperm.xlu0 %1294, %v320_v28   ;;  %v601_v9 = vsel %vm465_vm5, 1, %v1392_v3  ;;  %vm467_vm7 = vcmp.eq.s32.totalorder %v1606_v46, 0  ;;  %v604_v10 = vsel %vm468_vm6, 1, %v1392_v3  ;;  %vm470_vm8 = vcmp.eq.s32.totalorder %v1613_v49, 0 }
  0x30   : > { %v603_v11 = vsel %vm467_vm7, 1, %v1392_v3  ;;  %vm469_vm9 = vcmp.eq.s32.totalorder %v1616_v50, 0  ;;  %v606_v12 = vsel %vm470_vm8, 1, %v1392_v3  ;;  %vm472_vm10 = vcmp.eq.s32.totalorder %v1623_v53, 0  ;;  %p1298_p1 = pnand %p1297_p0, %p1484_p6  ;;  %p1305_p5 = por %p1304_p4, %p1303_p3 }
  0x31   : > { %v605_v13 = vsel %vm469_vm9, 1, %v1392_v3  ;;  %vm471_vm11 = vcmp.eq.s32.totalorder %v1626_v54, 0  ;;  %v608_v14 = vsel %vm472_vm10, 1, %v1392_v3  ;;  %vm474_vm12 = vcmp.eq.s32.totalorder %v455_v57, 0 }
  0x32   : > { %v607_v15 = vsel %vm471_vm11, 1, %v1392_v3  ;;  %vm473_vm13 = vcmp.eq.s32.totalorder %v454_v58, 0  ;;  %v610_v16 = vsel %vm474_vm12, 1, %v1392_v3  ;;  %vm476_vm14 = vcmp.eq.s32.totalorder %v457_v61, 0  ;;  %p1299_p2 = pneg %p1298_p1 }
  0x33   : > { %374 = vperm.xlu1 %1295, %v329_v29   ;;  %350 = vperm.xlu0 %1294, %v321_v30   ;;  %v609_v17 = vsel %vm473_vm13, 1, %v1392_v3  ;;  %vm475_vm15 = vcmp.eq.s32.totalorder %v456_v62, 0  ;;  %v612_v18 = vsel %vm476_vm14, 1, %v1392_v3  ;;  %vm713_vm0 = vcmask 785408  }
  0x34   : > { %v611_v19 = vsel %vm475_vm15, 1, %v1392_v3  ;;  %v1393_v24 = vmov 0.0   ;;  %p1306_p8 = pnand %p1305_p5, %p1299_p2 }
  0x37   : > { %377 = vperm.xlu1 %1295, %v330_v31   ;;  %353 = vperm.xlu0 %1294, %v322_v32  }
  0x3b   : > { %380 = vperm.xlu1 %1295, %v331_v35   ;;  %356 = vperm.xlu0 %1294, %v323_v36  }
  0x3f   : > { %513 = vperm.xlu1 %1295, %v494_v39   ;;  %510 = vperm.xlu0 %1294, %v493_v40  }
  0x43   : > { %519 = vperm.xlu1 %1295, %v496_v43   ;;  %516 = vperm.xlu0 %1294, %v495_v44  }
  0x47   : > { %525 = vperm.xlu1 %1295, %v498_v47   ;;  %522 = vperm.xlu0 %1294, %v497_v48  }
  0x4b   : > { %531 = vperm.xlu1 %1295, %v500_v51   ;;  %528 = vperm.xlu0 %1294, %v499_v52  }
  0x4f   : > { %537 = vperm.xlu1 %1295, %v502_v55   ;;  %534 = vperm.xlu0 %1294, %v501_v56  }
  0x53   : > { %543 = vperm.xlu1 %1295, %v504_v59   ;;  %540 = vperm.xlu0 %1294, %v503_v60  }
  0x57   : > { %549 = vperm.xlu1 %1295, %v506_v63   ;;  %546 = vperm.xlu0 %1294, %v505_v0  }
  0x5b   : > { %555 = vperm.xlu1 %1295, %v508_v1   ;;  %552 = vperm.xlu0 %1294, %v507_v2  }
  0x5f   : > { %617 = vperm.xlu1 %1295, %v598_v4   ;;  %614 = vperm.xlu0 %1294, %v597_v5  }
  0x63   : > { %623 = vperm.xlu1 %1295, %v600_v6   ;;  %620 = vperm.xlu0 %1294, %v599_v7  }
  0x67   : > { %629 = vperm.xlu1 %1295, %v602_v8   ;;  %626 = vperm.xlu0 %1294, %v601_v9  }
  0x6b   : > { %635 = vperm.xlu1 %1295, %v604_v10   ;;  %632 = vperm.xlu0 %1294, %v603_v11  }
  0x6f   : > { %641 = vperm.xlu1 %1295, %v606_v12   ;;  %638 = vperm.xlu0 %1294, %v605_v13  }
  0x73   : > { %647 = vperm.xlu1 %1295, %v608_v14   ;;  %644 = vperm.xlu0 %1294, %v607_v15   ;;  %v1750_v15 = vld [vmem:[%s1959_s4 + $0x1] ss:$0 sm:$0xff] }
  0x77   : > { %653 = vperm.xlu1 %1295, %v610_v16   ;;  %650 = vperm.xlu0 %1294, %v609_v17   ;;  %v1755_v16 = vld [vmem:[%s1959_s4 + $0x2] ss:$0 sm:$0xff]  ;;  %v698_v17 = vld [vmem:[%s1744_s22 + $0x8] sm:$0xff] }
  0x7b   : > { %659 = vperm.xlu1 %1295, %v612_v18   ;;  %656 = vperm.xlu0 %1294, %v611_v19   ;;  %v1761_v18 = vld [vmem:[%s1959_s4] ss:$0 sm:$0xff] }
  0x7c   : > { %v697_v19 = vld [vmem:[%s1744_s22] sm:$0xff] }
  0x9e   : > { %v339_v22 = vpop.permute.xlu1 %338  ;;  %v336_v23 = vpop.permute.xlu0 %335 }
  0x9f   : > { %vm383_vm1 = vcmp.eq.s32.totalorder %v1670_v21, %v339_v22  ;;  %vm382_vm2 = vcmp.eq.s32.totalorder %v1670_v21, %v336_v23 }
  0xa0   : > { %v1067_v25 = vsel %vm383_vm1, 1.0, %v1393_v24  ;;  %v1066_v26 = vsel %vm382_vm2, 1.0, %v1393_v24 }
  0xa1   : > { %1159 = vmatprep.mubr.msk.f32.mxu0 %vm713_vm0, %v1066_v26 }
  0xa2   : > { %v363_v27 = vpop.permute.xlu1 %362  ;;  %1160 = vmatmul.mubr.msk.f32.vlgmr.msra.gmra.mrb[0].mxu0 %vm713_vm0, %v1067_v25  ;;  %v360_v3 = vpop.permute.xlu0 %359 }
  0xa3   : > { %vm391_vm3 = vcmp.eq.s32.totalorder %v1670_v21, %v363_v27  ;;  %vm390_vm4 = vcmp.eq.s32.totalorder %v1670_v21, %v360_v3 }
  0xa4   : > { %v1075_v28 = vsel %vm391_vm3, 1.0, %v1393_v24  ;;  %v1074_v29 = vsel %vm390_vm4, 1.0, %v1393_v24 }
  0xa5   : > { %1171 = vmatprep.mubr.msk.f32.mxu1 %vm713_vm0, %v1074_v29 }
  0xa6   : > { %v366_v30 = vpop.permute.xlu1 %365  ;;  %1172 = vmatmul.mubr.msk.f32.vlgmr.msra.gmra.mrb[0].mxu1 %vm713_vm0, %v1075_v28  ;;  %v342_v31 = vpop.permute.xlu0 %341  ;;  %v706_v28 = vld [vmem:[%s1744_s22 + $0x48] sm:$0xff] }
  0xa7   : > { %vm392_vm5 = vcmp.eq.s32.totalorder %v1670_v21, %v366_v30  ;;  %vm384_vm6 = vcmp.eq.s32.totalorder %v1670_v21, %v342_v31  ;;  %v705_v31 = vld [vmem:[%s1744_s22 + $0x40] sm:$0xff] }
  0xa8   : > { %v1076_v32 = vsel %vm392_vm5, 1.0, %v1393_v24  ;;  %v1068_v33 = vsel %vm384_vm6, 1.0, %v1393_v24 }
  0xa9   : > { %1162 = vmatprep.mubr.msk.f32.mxu0 %vm713_vm0, %v1068_v33  ;;  %1174 = vmatprep.mubr.msk.f32.mxu1 %vm713_vm0, %v1076_v32 }
  0xaa   : > { %v369_v34 = vpop.permute.xlu1 %368  ;;  %v345_v35 = vpop.permute.xlu0 %344 }
  0xab   : > { %vm393_vm7 = vcmp.eq.s32.totalorder %v1670_v21, %v369_v34  ;;  %vm385_vm8 = vcmp.eq.s32.totalorder %v1670_v21, %v345_v35 }
  0xac   : > { %v1077_v36 = vsel %vm393_vm7, 1.0, %v1393_v24  ;;  %v1069_v37 = vsel %vm385_vm8, 1.0, %v1393_v24 }
  0xad   : > { %1163 = vmatmul.mubr.msk.f32.gmra.mrb[2].mxu0 %vm713_vm0, %v1069_v37  ;;  %1175 = vmatmul.mubr.msk.f32.gmra.mrb[2].mxu1 %vm713_vm0, %v1077_v36 }
  0xae   : > { %v372_v38 = vpop.permute.xlu1 %371  ;;  %v348_v39 = vpop.permute.xlu0 %347 }
  0xaf   : > { %vm394_vm9 = vcmp.eq.s32.totalorder %v1670_v21, %v372_v38  ;;  %vm386_vm10 = vcmp.eq.s32.totalorder %v1670_v21, %v348_v39 }
  0xb0   : > { %v1078_v40 = vsel %vm394_vm9, 1.0, %v1393_v24  ;;  %v1070_v41 = vsel %vm386_vm10, 1.0, %v1393_v24 }
  0xb1   : > { %1165 = vmatprep.mubr.msk.f32.mxu0 %vm713_vm0, %v1070_v41  ;;  %1177 = vmatprep.mubr.msk.f32.mxu1 %vm713_vm0, %v1078_v40 }
  0xb2   : > { %v375_v42 = vpop.permute.xlu1 %374  ;;  %v351_v43 = vpop.permute.xlu0 %350 }
  0xb3   : > { %vm395_vm11 = vcmp.eq.s32.totalorder %v1670_v21, %v375_v42  ;;  %vm387_vm12 = vcmp.eq.s32.totalorder %v1670_v21, %v351_v43 }
  0xb4   : > { %v1079_v44 = vsel %vm395_vm11, 1.0, %v1393_v24  ;;  %v1071_v45 = vsel %vm387_vm12, 1.0, %v1393_v24 }
  0xb5   : > { %1166 = vmatmul.mubr.msk.f32.gmra.mrb[4].mxu0 %vm713_vm0, %v1071_v45  ;;  %1178 = vmatmul.mubr.msk.f32.gmra.mrb[4].mxu1 %vm713_vm0, %v1079_v44  ;;  %v700_v45 = vld [vmem:[%s1744_s22 + $0x18] sm:$0xff] }
  0xb6   : > { %v378_v46 = vpop.permute.xlu1 %377  ;;  %v354_v47 = vpop.permute.xlu0 %353 }
  0xb7   : > { %vm396_vm13 = vcmp.eq.s32.totalorder %v1670_v21, %v378_v46  ;;  %vm388_vm14 = vcmp.eq.s32.totalorder %v1670_v21, %v354_v47  ;;  %v708_v46 = vld [vmem:[%s1744_s22 + $0x58] sm:$0xff]  ;;  %v699_v47 = vld [vmem:[%s1744_s22 + $0x10] sm:$0xff] }
  0xb8   : > { %v1080_v48 = vsel %vm396_vm13, 1.0, %v1393_v24  ;;  %v1072_v49 = vsel %vm388_vm14, 1.0, %v1393_v24 }
  0xb9   : > { %1168 = vmatprep.mubr.msk.f32.mxu0 %vm713_vm0, %v1072_v49  ;;  %1180 = vmatprep.mubr.msk.f32.mxu1 %vm713_vm0, %v1080_v48  ;;  %v707_v48 = vld [vmem:[%s1744_s22 + $0x50] sm:$0xff] }
  0xba   : > { %v381_v50 = vpop.permute.xlu1 %380  ;;  %v357_v51 = vpop.permute.xlu0 %356 }
  0xbb   : > { %vm397_vm15 = vcmp.eq.s32.totalorder %v1670_v21, %v381_v50  ;;  %vm389_vm1 = vcmp.eq.s32.totalorder %v1670_v21, %v357_v51 }
  0xbc   : > { %v1081_v52 = vsel %vm397_vm15, 1.0, %v1393_v24  ;;  %v1073_v53 = vsel %vm389_vm1, 1.0, %v1393_v24 }
  0xbd   : > { %1169 = vmatmul.mubr.msk.f32.gmra.mrb[6].mxu0 %vm713_vm0, %v1073_v53  ;;  %1181 = vmatmul.mubr.msk.f32.gmra.mrb[6].mxu1 %vm713_vm0, %v1081_v52 }
  0xbe   : > { %v514_v54 = vpop.permute.xlu1 %513  ;;  %v511_v55 = vpop.permute.xlu0 %510 }
  0xbf   : > { %vm558_vm0 = vcmp.eq.s32.totalorder %v514_v54, 1  ;;  %vm557_vm2 = vcmp.eq.s32.totalorder %v511_v55, 1 }
  0xc0   : > { %v582_v22 = vsel %vm558_vm0, %v1750_v15, %v1755_v16  ;;  %v581_v26 = vsel %vm557_vm2, %v1750_v15, %v1755_v16 }
  0xc2   : > { %v1704_v56 = vpop.permute.xlu1 %519  ;;  %v1706_v57 = vpop.permute.xlu0 %516 }
  0xc3   : > { %vm560_vm9 = vcmp.eq.s32.totalorder %v1704_v56, 1  ;;  %vm559_vm10 = vcmp.eq.s32.totalorder %v1706_v57, 1 }
  0xc4   : > { %v584_v49 = vsel %vm560_vm9, %v1750_v15, %v1755_v16  ;;  %v583_v50 = vsel %vm559_vm10, %v1750_v15, %v1755_v16 }
  0xc6   : > { %v1708_v58 = vpop.permute.xlu1 %525  ;;  %v1710_v59 = vpop.permute.xlu0 %522 }
  0xc7   : > { %vm562_vm0 = vcmp.eq.s32.totalorder %v1708_v58, 1  ;;  %vm561_vm2 = vcmp.eq.s32.totalorder %v1710_v59, 1 }
  0xc8   : > { %v586_v58 = vsel %vm562_vm0, %v1750_v15, %v1755_v16  ;;  %v585_v59 = vsel %vm561_vm2, %v1750_v15, %v1755_v16 }
  0xca   : > { %v1712_v60 = vpop.permute.xlu1 %531  ;;  %v1714_v61 = vpop.permute.xlu0 %528 }
  0xcb   : > { %vm564_vm9 = vcmp.eq.s32.totalorder %v1712_v60, 1  ;;  %vm563_vm10 = vcmp.eq.s32.totalorder %v1714_v61, 1 }
  0xce   : > { %v538_v62 = vpop.permute.xlu1 %537  ;;  %v535_v63 = vpop.permute.xlu0 %534 }
  0xcf   : > { %vm566_vm5 = vcmp.eq.s32.totalorder %v538_v62, 1  ;;  %vm565_vm6 = vcmp.eq.s32.totalorder %v535_v63, 1 }
  0xd0   : > { %v590_v34 = vsel %vm566_vm5, %v1750_v15, %v1755_v16  ;;  %v589_v37 = vsel %vm565_vm6, %v1750_v15, %v1755_v16 }
  0xd2   : > { %v1716_v0 = vpop.permute.xlu1 %543  ;;  %v1718_v1 = vpop.permute.xlu0 %540 }
  0xd3   : > { %vm568_vm11 = vcmp.eq.s32.totalorder %v1716_v0, 1  ;;  %vm567_vm12 = vcmp.eq.s32.totalorder %v1718_v1, 1 }
  0xd4   : > { %v592_v53 = vsel %vm568_vm11, %v1750_v15, %v1755_v16  ;;  %v591_v54 = vsel %vm567_vm12, %v1750_v15, %v1755_v16 }
  0xd6   : > { %v1720_v2 = vpop.permute.xlu1 %549  ;;  %v1722_v4 = vpop.permute.xlu0 %546 }
  0xda   : > { %v1724_v5 = vpop.permute.xlu1 %555  ;;  %v1726_v6 = vpop.permute.xlu0 %552 }
  0xdb   : > { %vm572_vm11 = vcmp.eq.s32.totalorder %v1724_v5, 1  ;;  %vm571_vm12 = vcmp.eq.s32.totalorder %v1726_v6, 1 }
  0xdc   : > { %v595_v60 = vsel %vm571_vm12, %v1750_v15, %v1755_v16 }
  0xde   : > { %v618_v7 = vpop.permute.xlu1 %617  ;;  %v615_v8 = vpop.permute.xlu0 %614 }
  0xdf   : > { %vm662_vm3 = vcmp.eq.s32.totalorder %v618_v7, 1  ;;  %vm661_vm4 = vcmp.eq.s32.totalorder %v615_v8, 1 }
  0xe0   : > { %v682_v27 = vsel %vm662_vm3, %v1761_v18, %v582_v22  ;;  %v681_v29 = vsel %vm661_vm4, %v1761_v18, %v581_v26  ;;  %vm570_vm3 = vcmp.eq.s32.totalorder %v1720_v2, 1  ;;  %vm569_vm4 = vcmp.eq.s32.totalorder %v1722_v4, 1  ;;  %v709_v26 = vld [vmem:[%s1744_s22 + $0x60] sm:$0xff] }
  0xe2   : > { %v1729_v9 = vpop.permute.xlu1 %623  ;;  %v1731_v10 = vpop.permute.xlu0 %620 }
  0xe3   : > { %vm664_vm13 = vcmp.eq.s32.totalorder %v1729_v9, 1  ;;  %vm663_vm15 = vcmp.eq.s32.totalorder %v1731_v10, 1 }
  0xe4   : > { %v684_v63 = vsel %vm664_vm13, %v1761_v18, %v584_v49  ;;  %v683_v1 = vsel %vm663_vm15, %v1761_v18, %v583_v50  ;;  %v596_v50 = vsel %vm572_vm11, %v1750_v15, %v1755_v16 }
  0xe6   : > { %v1733_v11 = vpop.permute.xlu1 %629  ;;  %v1735_v12 = vpop.permute.xlu0 %626 }
  0xe7   : > { %vm666_vm5 = vcmp.eq.s32.totalorder %v1733_v11, 1 }
  0xea   : > { %v1737_v13 = vpop.permute.xlu1 %635  ;;  %v1739_v14 = vpop.permute.xlu0 %632 }
  0xeb   : > { %vm668_vm13 = vcmp.eq.s32.totalorder %v1737_v13, 1  ;;  %vm667_vm15 = vcmp.eq.s32.totalorder %v1739_v14, 1 }
  0xee   : > { %v642_v20 = vpop.permute.xlu1 %641  ;;  %v639_v23 = vpop.permute.xlu0 %638 }
  0xef   : > { %vm670_vm7 = vcmp.eq.s32.totalorder %v642_v20, 1  ;;  %vm669_vm8 = vcmp.eq.s32.totalorder %v639_v23, 1  ;;  %v702_v23 = vld [vmem:[%s1744_s22 + $0x28] sm:$0xff] }
  0xf0   : > { %v690_v38 = vsel %vm670_vm7, %v1761_v18, %v590_v34  ;;  %v689_v40 = vsel %vm669_vm8, %v1761_v18, %v589_v37  ;;  %vm665_vm7 = vcmp.eq.s32.totalorder %v1735_v12, 1  ;;  %v686_v12 = vsel %vm666_vm5, %v1761_v18, %v586_v58 }
  0xf1   : > { %v685_v4 = vsel %vm665_vm7, %v1761_v18, %v585_v59 }
  0xf2   : > { %v648_v41 = vpop.permute.xlu1 %647  ;;  %v645_v43 = vpop.permute.xlu0 %644 }
  0xf3   : > { %vm672_vm14 = vcmp.eq.s32.totalorder %v648_v41, 1  ;;  %vm671_vm1 = vcmp.eq.s32.totalorder %v645_v43, 1  ;;  %v712_v43 = vld [vmem:[%s1744_s22 + $0x78] sm:$0xff] }
  0xf4   : > { %v692_v7 = vsel %vm672_vm14, %v1761_v18, %v592_v53  ;;  %v691_v10 = vsel %vm671_vm1, %v1761_v18, %v591_v54 }
  0xf6   : > { %v654_v20 = vpop.permute.xlu1 %653  ;;  %v651_v22 = vpop.permute.xlu0 %650 }
  0xf7   : > { %vm674_vm6 = vcmp.eq.s32.totalorder %v654_v20, 1  ;;  %vm673_vm8 = vcmp.eq.s32.totalorder %v651_v22, 1 }
  0xfa   : > { %v657_v41 = vpop.permute.xlu0 %656 }
  0xfb   : > { %vm675_vm1 = vcmp.eq.s32.totalorder %v657_v41, 1 }
 0x175   : > { %v1161_v21 = vpop.f32.mrb[0].mxu0 }
 0x176   : > { %v834_v24 = vadd.f32 %v1161_v21, %v698_v17  ;;  %v828_v25 = vpop.f32.mrb[1].mxu0 }
 0x177   : > { %v829_v3 = vadd.f32 %v828_v25, %v697_v19  ;;  %v701_v25 = vld [vmem:[%s1744_s22 + $0x20] sm:$0xff] }
 0x178   : > { %v908_v30 = vadd.f32 %v834_v24, %v682_v27  ;;  %v710_v24 = vld [vmem:[%s1744_s22 + $0x68] sm:$0xff] }
 0x179   : > { %v907_v32 = vadd.f32 %v829_v3, %v681_v29  ;;  %v1173_v33 = vpop.f32.mrb[0].mxu1  ;;  %v593_v29 = vsel %vm569_vm4, %v1750_v15, %v1755_v16 }
 0x17a   : > { %924 = vst [vmem:[%s1776_s16 + $0x8] sm:$0xff] %v908_v30  ;;  %v874_v35 = vadd.f32 %v1173_v33, %v706_v28  ;;  %v868_v36 = vpop.f32.mrb[1].mxu1  ;;  %v594_v28 = vsel %vm570_vm3, %v1750_v15, %v1755_v16 }
 0x17b   : > { %923 = vst [vmem:[%s1776_s16] sm:$0xff] %v907_v32  ;;  %v869_v39 = vadd.f32 %v868_v36, %v705_v31  ;;  %v694_v34 = vsel %vm674_vm6, %v1761_v18, %v594_v28  ;;  %v693_v36 = vsel %vm673_vm8, %v1761_v18, %v593_v29 }
 0x17c   : > { %v916_v42 = vadd.f32 %v874_v35, %v690_v38 }
 0x17d   : > { %v915_v44 = vadd.f32 %v869_v39, %v689_v40  ;;  %v660_v39 = vpop.permute.xlu1 %659 }
 0x17e   : > { %932 = vst [vmem:[%s1776_s16 + $0x48] sm:$0xff] %v916_v42  ;;  %v704_v42 = vld [vmem:[%s1744_s22 + $0x38] sm:$0xff]  ;;  %vm676_vm14 = vcmp.eq.s32.totalorder %v660_v39, 1 }
 0x17f   : > { %931 = vst [vmem:[%s1776_s16 + $0x40] sm:$0xff] %v915_v44  ;;  %v703_v44 = vld [vmem:[%s1744_s22 + $0x30] sm:$0xff]  ;;  %v696_v6 = vsel %vm676_vm14, %v1761_v18, %v596_v50 }
 0x180   : > { %v1164_v51 = vpop.f32.mrb[2].mxu0  ;;  %v1176_v52 = vpop.f32.mrb[2].mxu1 }
 0x181   : > { %v844_v55 = vadd.f32 %v1164_v51, %v700_v45  ;;  %v884_v56 = vadd.f32 %v1176_v52, %v708_v46  ;;  %v838_v57 = vpop.f32.mrb[3].mxu0  ;;  %v878_v62 = vpop.f32.mrb[3].mxu1  ;;  %v711_v45 = vld [vmem:[%s1744_s22 + $0x70] sm:$0xff]  ;;  %v588_v46 = vsel %vm564_vm9, %v1750_v15, %v1755_v16  ;;  %s1883_s22 = scalar_lea.hbm %s1960_s5, %s1106_s30 }
 0x182   : > { %v839_v0 = vadd.f32 %v838_v57, %v699_v47  ;;  %v879_v8 = vadd.f32 %v878_v62, %v707_v48  ;;  %v587_v47 = vsel %vm563_vm10, %v1750_v15, %v1755_v16  ;;  %v688_v5 = vsel %vm668_vm13, %v1761_v18, %v588_v46 }
 0x183   : > { %v910_v17 = vadd.f32 %v844_v55, %v684_v63  ;;  %v918_v19 = vadd.f32 %v884_v56, %v692_v7  ;;  %v687_v54 = vsel %vm667_vm15, %v1761_v18, %v587_v47  ;;  %v695_v55 = vsel %vm675_vm1, %v1761_v18, %v595_v60 }
 0x184   : > { %v909_v9 = vadd.f32 %v839_v0, %v683_v1  ;;  %v917_v21 = vadd.f32 %v879_v8, %v691_v10 }
 0x185   : > { %926 = vst [vmem:[%s1776_s16 + $0x18] sm:$0xff] %v910_v17  ;;  %934 = vst [vmem:[%s1776_s16 + $0x58] sm:$0xff] %v918_v19 }
 0x186   : > { %925 = vst [vmem:[%s1776_s16 + $0x10] sm:$0xff] %v909_v9  ;;  %933 = vst [vmem:[%s1776_s16 + $0x50] sm:$0xff] %v917_v21 }
 0x188   : > { %v1167_v27 = vpop.f32.mrb[4].mxu0  ;;  %v1179_v3 = vpop.f32.mrb[4].mxu1 }
 0x189   : > { %v854_v30 = vadd.f32 %v1167_v27, %v702_v23  ;;  %v894_v31 = vadd.f32 %v1179_v3, %v710_v24  ;;  %v848_v32 = vpop.f32.mrb[5].mxu0  ;;  %v888_v33 = vpop.f32.mrb[5].mxu1 }
 0x18a   : > { %v849_v2 = vadd.f32 %v848_v32, %v701_v25  ;;  %v889_v35 = vadd.f32 %v888_v33, %v709_v26 }
 0x18b   : > { %v912_v37 = vadd.f32 %v854_v30, %v686_v12  ;;  %v920_v38 = vadd.f32 %v894_v31, %v694_v34 }
 0x18c   : > { %v911_v11 = vadd.f32 %v849_v2, %v685_v4  ;;  %v919_v40 = vadd.f32 %v889_v35, %v693_v36 }
 0x18d   : > { %928 = vst [vmem:[%s1776_s16 + $0x28] sm:$0xff] %v912_v37  ;;  %936 = vst [vmem:[%s1776_s16 + $0x68] sm:$0xff] %v920_v38 }
 0x18e   : > { %927 = vst [vmem:[%s1776_s16 + $0x20] sm:$0xff] %v911_v11  ;;  %935 = vst [vmem:[%s1776_s16 + $0x60] sm:$0xff] %v919_v40 }
 0x190   : > { %v1170_v48 = vpop.f32.mrb[6].mxu0  ;;  %v1182_v49 = vpop.f32.mrb[6].mxu1 }
 0x191   : > { %v864_v51 = vadd.f32 %v1170_v48, %v704_v42  ;;  %v904_v61 = vadd.f32 %v1182_v49, %v712_v43  ;;  %v858_v52 = vpop.f32.mrb[7].mxu0  ;;  %v898_v53 = vpop.f32.mrb[7].mxu1 }
 0x192   : > { %v859_v15 = vadd.f32 %v858_v52, %v703_v44  ;;  %v899_v16 = vadd.f32 %v898_v53, %v711_v45 }
 0x193   : > { %v914_v56 = vadd.f32 %v864_v51, %v688_v5  ;;  %v922_v57 = vadd.f32 %v904_v61, %v696_v6 }
 0x194   : > { %v913_v13 = vadd.f32 %v859_v15, %v687_v54  ;;  %v921_v62 = vadd.f32 %v899_v16, %v695_v55 }
 0x195   : > { %930 = vst [vmem:[%s1776_s16 + $0x38] sm:$0xff] %v914_v56  ;;  %938 = vst [vmem:[%s1776_s16 + $0x78] sm:$0xff] %v922_v57 }
 0x196   : > { %929 = vst [vmem:[%s1776_s16 + $0x30] sm:$0xff] %v913_v13  ;;  %937 = vst [vmem:[%s1776_s16 + $0x70] sm:$0xff] %v921_v62 }
 0x197   : > { %1309 = shalt.err (!%p1306_p8)
}
 0x198   : > { %s1310_s14 = scalar_lea.hbm %s1883_s22, 2048  ;;  %s1314_s16 = scalar_lea.hbm %s1960_s5, 12288 }
 0x199   : > { %p1311_p9 = scmp.ne.s32.totalorder %s1883_s22, %s1310_s14  ;;  %p1315_p12 = scmp.lt.u32.totalorder %s1883_s22, %s1960_s5 }
 0x19a   : > { %p1316_p13 = scmp.lt.u32.totalorder %s1314_s16, %s1310_s14  ;;  %p1318_p1 = scmp.lt.u32.totalorder %s1310_s14, %s1883_s22 }
 0x19b   : > { %p1312_p10 = pnand %p1311_p9, %p1484_p6 }
 0x19c   : > { %p1317_p0 = por %p1316_p13, %p1315_p12 }
 0x19d   : > { %p1313_p11 = pneg %p1312_p10 }
 0x19e   : > { %p1319_p2 = por %p1318_p1, %p1317_p0 }
 0x1a0   : > { %p1320_p3 = pnand %p1319_p2, %p1313_p11 }
 0x1a2   : > { %1323 = shalt.err (!%p1320_p3)
}
 0x1a3   : > { %s1395_s15 = smov 128   ;;  %s1396_s26 = smov 8  }
 0x1a4   : > { %1219 = dma.vmem_to_hbm [thread:$0]  (%p1484_p6), %s1895_s7, 2048, %s1883_s22, %s1903_s17, %s1395_s15, %s1395_s15, %s1396_s26  }
 0x1a5 PF: > { %p1225_p4 = scmp.ge.s32.totalorder %s1390_s25, 2  ;;  %s970_s27 = sand.u32 1, %s1362_s18  }
 0x1a6   : > { %s971_s6 = scalar_lea.sflag [#allocation3], %s970_s27 }
 0x1a7   : > { %p1222_p5 = pnand %p1225_p4, %p1488_p7 }
 0x1a9   : > { %1357 = dma.done.wait (!%p1222_p5), %s971_s6, 2048  }
 0x1aa   : > { %1359 = vsyncadd (!%p1222_p5), %s971_s6, 4294965248  ;;  %s18_s25 = sadd.s32 1, %s1390_s25   ;;  %s1963_s18 = smov %s1366_s19 }
 0x1ab   : > { %p15_p8 = scmp.ge.s32.totalorder %s18_s25, 8   ;;  %s1964_s19 = smov %s1370_s20 }
 0x1ac   : > { %s1965_s20 = smov %s1496_s13  ;;  %s1966_s21 = smov %s1382_s23 }
 0x1ad   : > { %s1967_s22 = smov %s1386_s24  ;;  %s1968_s23 = smov %s1971_s28 }
 0x1ae   : > { %s1969_s24 = smov %s1975_s29  ;;  %17 = sbr.rel (!%p15_p8) target bundleno = 5 (0x5), region = 81 }
 0x1b5   :  { %976 = vsyncpa [#allocation3], 1 }
 0x1b6   :  { %978 = vsyncpa [#allocation3 + $0x1], 1 }

</bundles_post_ra>
